<compile_context>
chip_gen: v7x
topology: tpu7x:2x2x1
jax: 0.10.0
libtpu: 0.0.40
codegen_flags: <defaults>
</compile_context>

<pallas_src>
import functools

import jax
import jax.numpy as jnp
from jax.experimental import pallas as pl
from jax.experimental.pallas import tpu as pltpu

BN_EPS = 1e-5


# ----------------------------------------------------------------------------
# Tiling helpers (generation-aware)
# ----------------------------------------------------------------------------
def _vmem_caps():
    """Per-block byte budget and a cap for vmem_limit_bytes, per TPU gen."""
    try:
        cap = int(pltpu.get_tpu_info().vmem_capacity_bytes)
    except Exception:
        cap = 64 << 20  # conservative (v7x per-core VMEM)
    block_budget = max(4 << 20, min(12 << 20, cap // 8))  # 8 MiB v7x, 12 MiB v5e/v6e
    limit_cap = max(16 << 20, cap - (8 << 20))
    return block_budget, limit_cap


def _vmem_limit(block_bytes, limit_cap):
    need = 2 * int(block_bytes) + (4 << 20)   # double-buffered block + headroom
    return int(min(max(need, 16 << 20), limit_cap))


def _largest_divisor_leq(n, cap, step):
    """Largest multiple of `step` that divides `n` and is <= cap (or None)."""
    cap = int(min(cap, n))
    start = cap - (cap % step)
    for d in range(start, step - 1, -step):
        if d > 0 and n % d == 0:
            return d
    return None


def _choose_pool_tiles(bc, hw, elem, budget):
    """Pick (bc_tile, hw_tile) for the pooling stage, block ~= budget bytes."""
    sub = 8 if elem >= 4 else (16 if elem == 2 else 32)
    if bc * hw * elem <= budget:
        return bc, hw                                   # single block
    # Prefer full-H*W rows (no reduction grid axis, rows stay "parallel").
    rows_cap = budget // (hw * elem)
    if rows_cap >= sub:
        d = _largest_divisor_leq(bc, rows_cap, sub)
        if d is not None:
            return d, hw
    # Must tile H*W (reduction axis).  Keep rows as wide as the budget allows.
    bc_cap = max(sub, budget // (512 * elem))
    bc_tile = _largest_divisor_leq(bc, bc_cap, sub)
    if bc_tile is None:
        bc_tile = bc
    hw_cap = max(128, budget // (bc_tile * elem))
    hw_tile = (hw_cap // 128) * 128
    if hw_tile >= hw:
        hw_tile = hw
    elif hw % 128 == 0:
        d = _largest_divisor_leq(hw, hw_tile, 128)      # avoid ragged tail
        if d is not None:
            hw_tile = d
    return bc_tile, hw_tile


# ----------------------------------------------------------------------------
# Stage 1: streamed global average pool over H*W
# ----------------------------------------------------------------------------
def _pool_kernel(x_ref, o_ref, *, hw_valid, hw_tile, ragged):
    k = pl.program_id(1)

    @pl.when(k == 0)
    def _():
        o_ref[...] = jnp.zeros_like(o_ref)

    x = x_ref[...].astype(jnp.float32)
    if ragged:
        # Zero out columns past the true H*W extent (last tile's OOB lanes).
        col = jax.lax.broadcasted_iota(jnp.int32, x.shape, 1) + k * hw_tile
        x = jnp.where(col < hw_valid, x, 0.0)
    o_ref[...] += jnp.sum(x, axis=-1, keepdims=True)

    @pl.when(k == pl.num_programs(1) - 1)
    def _():
        o_ref[...] = o_ref[...] * (1.0 / float(hw_valid))


# ----------------------------------------------------------------------------
# Stage 2: 1x1 conv (matmul) + BatchNorm2d(train) + ReLU, computed once
# ----------------------------------------------------------------------------
def _tail_kernel(pooled_ref, w_ref, gamma_ref, beta_ref, y_ref):
    h = jnp.dot(pooled_ref[...], w_ref[...],
                preferred_element_type=jnp.float32)         # (B, out_ch)
    # BatchNorm2d training mode: stats over N*H*W = B (H=W=1 after the pool).
    mu = jnp.mean(h, axis=0, keepdims=True)
    var = jnp.mean((h - mu) * (h - mu), axis=0, keepdims=True)
    y = (h - mu) * jax.lax.rsqrt(var + BN_EPS) * gamma_ref[...] + beta_ref[...]
    y_ref[...] = jnp.maximum(y, 0.0)                        # ReLU


# ----------------------------------------------------------------------------
# Stage 3: broadcast-write over the spatial extent (== bilinear from 1x1)
# ----------------------------------------------------------------------------
def _broadcast_kernel(y_ref, o_ref):
    o_ref[...] = jnp.broadcast_to(
        y_ref[...][:, :, None], o_ref.shape).astype(o_ref.dtype)


# ----------------------------------------------------------------------------
# Wrapper
# ----------------------------------------------------------------------------
def image_pool_forward(x, conv_weight, bn_gamma, bn_beta, *,
                       bc_tile=None, hw_tile=None, hw_out_tile=None):
    """_ImagePool forward.

    x:           (B, C, H, W)
    conv_weight: (out_ch, C, 1, 1) or (out_ch, C)  -- PyTorch Conv2d layout
    bn_gamma, bn_beta: (out_ch,)
    Returns (B, out_ch, H, W) with x's dtype.
    """
    B, C, H, W = x.shape
    out_ch = bn_gamma.shape[0]
    HW = H * W
    BC = B * C
    out_dtype = x.dtype
    in_elem = jnp.dtype(x.dtype).itemsize
    out_elem = jnp.dtype(out_dtype).itemsize

    block_budget, limit_cap = _vmem_caps()

    # ---- Stage 1 tiling -----------------------------------------------------
    d_bc, d_hw = _choose_pool_tiles(BC, HW, in_elem, block_budget)
    bc_tile = d_bc if bc_tile is None else bc_tile
    hw_tile = d_hw if hw_tile is None else hw_tile
    assert bc_tile == BC or (bc_tile % 8 == 0 and BC % bc_tile == 0), bc_tile
    assert hw_tile == HW or hw_tile % 128 == 0, hw_tile

    n_bc = BC // bc_tile
    n_hw = (HW + hw_tile - 1) // hw_tile
    ragged = (HW % hw_tile) != 0

    x2 = x.reshape(BC, HW)                                  # free reshape

    pooled = pl.pallas_call(
        functools.partial(_pool_kernel, hw_valid=HW, hw_tile=hw_tile,
                          ragged=ragged),
        out_shape=jax.ShapeDtypeStruct((BC, 1), jnp.float32),
        grid_spec=pltpu.PrefetchScalarGridSpec(
            num_scalar_prefetch=0,
            grid=(n_bc, n_hw),
            in_specs=[pl.BlockSpec((bc_tile, hw_tile), lambda i, k: (i, k))],
            out_specs=pl.BlockSpec((bc_tile, 1), lambda i, k: (i, 0)),
        ),
        compiler_params=pltpu.CompilerParams(
            dimension_semantics=("parallel", "arbitrary"),
            vmem_limit_bytes=_vmem_limit(bc_tile * hw_tile * in_elem,
                                         limit_cap)),
    )(x2)

    # ---- Stage 2: tiny tail, computed once ----------------------------------
    w2 = conv_weight.reshape(out_ch, -1)
    assert w2.shape[1] == C
    w2 = jnp.transpose(w2).astype(jnp.float32)              # (C, out_ch)
    gamma2 = bn_gamma.reshape(1, out_ch).astype(jnp.float32)
    beta2 = bn_beta.reshape(1, out_ch).astype(jnp.float32)
    pooled2 = pooled.reshape(B, C)

    y = pl.pallas_call(
        _tail_kernel,
        out_shape=jax.ShapeDtypeStruct((B, out_ch), jnp.float32),
    )(pooled2, w2, gamma2, beta2)

    # ---- Stage 3 tiling (independent of stage 1; pure HBM-write stream) -----
    if hw_out_tile is None:
        if B * out_ch * HW * out_elem <= block_budget:
            hw_out_tile = HW
        else:
            cap = max(128, block_budget // (B * out_ch * out_elem))
            hw_out_tile = (cap // 128) * 128
            if hw_out_tile >= HW:
                hw_out_tile = HW
            elif HW % 128 == 0:
                d = _largest_divisor_leq(HW, hw_out_tile, 128)
                if d is not None:
                    hw_out_tile = d
    assert hw_out_tile == HW or hw_out_tile % 128 == 0, hw_out_tile
    n_out = (HW + hw_out_tile - 1) // hw_out_tile

    out_flat = pl.pallas_call(
        _broadcast_kernel,
        out_shape=jax.ShapeDtypeStruct((B, out_ch, HW), out_dtype),
        grid_spec=pltpu.PrefetchScalarGridSpec(
            num_scalar_prefetch=0,
            grid=(n_out,),
            in_specs=[pl.BlockSpec((B, out_ch), lambda k: (0, 0))],
            out_specs=pl.BlockSpec((B, out_ch, hw_out_tile),
                                   lambda k: (0, 0, k)),
        ),
        compiler_params=pltpu.CompilerParams(
            dimension_semantics=("parallel",),
            vmem_limit_bytes=_vmem_limit(
                B * out_ch * hw_out_tile * out_elem, limit_cap)),
    )(y)

    return out_flat.reshape(B, out_ch, H, W)


# ----------------------------------------------------------------------------
# Plain-JAX reference for sanity checking
# ----------------------------------------------------------------------------
def _reference(x, conv_weight, gamma, beta):
    B, C, H, W = x.shape
    out_ch = gamma.shape[0]
    pooled = jnp.mean(x.astype(jnp.float32), axis=(2, 3))           # (B, C)
    h = pooled @ jnp.transpose(conv_weight.reshape(out_ch, C))      # (B, out_ch)
    mu = jnp.mean(h, axis=0, keepdims=True)
    var = jnp.mean((h - mu) ** 2, axis=0, keepdims=True)
    y = jnp.maximum((h - mu) * jax.lax.rsqrt(var + BN_EPS) * gamma + beta, 0.0)
    return jnp.broadcast_to(y[:, :, None, None],
                            (B, out_ch, H, W)).astype(x.dtype)


if __name__ == "__main__":
    B, in_ch, out_ch, H, W = 2, 4, 8, 16, 16

    key = jax.random.PRNGKey(0)
    kx, kw, kg, kb = jax.random.split(key, 4)

    x = jax.random.normal(kx, (B, in_ch, H, W), dtype=jnp.float32)
    # PyTorch Conv2d weight layout: (out_ch, in_ch, 1, 1).
    w = jax.random.normal(kw, (out_ch, in_ch, 1, 1), dtype=jnp.float32) * 0.1
    gamma = 1.0 + 0.1 * jax.random.normal(kg, (out_ch,), dtype=jnp.float32)
    beta = 0.05 * jax.random.normal(kb, (out_ch,), dtype=jnp.float32)

    ref = _reference(x, w, gamma, beta)

    # Default (generation-aware) tiling: single-block fast path at this size.
    out = image_pool_forward(x, w, gamma, beta)
    jax.block_until_ready(out)
    assert out.shape == (B, out_ch, H, W)
    assert bool(jnp.allclose(out, ref, atol=1e-4, rtol=1e-4))

    # Forced small tiles: exercises the pipelined H*W-reduction / output grid.
    out_t = image_pool_forward(x, w, gamma, beta,
                               bc_tile=8, hw_tile=128, hw_out_tile=128)
    jax.block_until_ready(out_t)
    assert bool(jnp.allclose(out_t, ref, atol=1e-4, rtol=1e-4))

    # Ragged H*W (144, not a multiple of the 128 tile): exercises the
    # in-kernel tail mask and ragged output blocks (no pad / slice passes).
    H2 = W2 = 12
    x2 = jax.random.normal(kx, (B, in_ch, H2, W2), dtype=jnp.float32)
    ref2 = _reference(x2, w, gamma, beta)
    out2 = image_pool_forward(x2, w, gamma, beta,
                              bc_tile=8, hw_tile=128, hw_out_tile=128)
    jax.block_until_ready(out2)
    assert out2.shape == (B, out_ch, H2, W2)
    assert bool(jnp.allclose(out2, ref2, atol=1e-4, rtol=1e-4))

    print("KERNEL_OK")
</pallas_src>

<mosaic_0001>
module attributes {stable_mosaic.version = 11 : i64} {
  func.func @_pool_kernel(%arg0: i32, %arg1: i32, %arg2: memref<8x256xf32, #tpu.memory_space<vmem>>, %arg3: memref<8x1xf32, #tpu.memory_space<vmem>>) attributes {dimension_semantics = [#tpu.dimension_semantics<parallel>, #tpu.dimension_semantics<arbitrary>], iteration_bounds = array<i64: 1, 1>, scalar_prefetch = 0 : i64, scratch_operands = 0 : i64, tpu.core_type = #tpu.core_type<tc>, window_params = [{transform_indices = @transform_0, window_bounds = array<i64: 8, 256>}, {transform_indices = @transform_1, window_bounds = array<i64: 8, 1>}]} {
    %c0_i32 = arith.constant 0 : i32
    %0 = arith.cmpi eq, %arg1, %c0_i32 : i32
    %1 = arith.extui %0 : i1 to i32
    %c0_i32_0 = arith.constant 0 : i32
    %2 = arith.cmpi ne, %1, %c0_i32_0 : i32
    scf.if %2 {
      %cst_8 = arith.constant 0.000000e+00 : f32
      %12 = vector.broadcast %cst_8 : f32 to vector<8x1xf32>
      %c0_9 = arith.constant 0 : index
      %c0_10 = arith.constant 0 : index
      %13 = vector.load %arg3[%c0_9, %c0_10] : memref<8x1xf32, #tpu.memory_space<vmem>>, vector<8x1xf32>
      tpu.vector_store %arg3[%c0_9, %c0_10], %12 {strides = array<i32>} : memref<8x1xf32, #tpu.memory_space<vmem>>, vector<8x1xf32>,
    } else {
    }
    %c0 = arith.constant 0 : index
    %c0_1 = arith.constant 0 : index
    %3 = vector.load %arg2[%c0, %c0_1] : memref<8x256xf32, #tpu.memory_space<vmem>>, vector<8x256xf32>
    %c0_2 = arith.constant 0 : index
    %c0_3 = arith.constant 0 : index
    %4 = vector.load %arg3[%c0_2, %c0_3] : memref<8x1xf32, #tpu.memory_space<vmem>>, vector<8x1xf32>
    %cst = arith.constant dense<0.000000e+00> : vector<8xf32>
    %5 = vector.multi_reduction <add>, %3, %cst [1] : vector<8x256xf32> to vector<8xf32>
    %6 = vector.shape_cast %5 : vector<8xf32> to vector<8x1xf32>
    %7 = arith.addf %4, %6 : vector<8x1xf32>
    %c0_4 = arith.constant 0 : index
    %c0_5 = arith.constant 0 : index
    %8 = vector.load %arg3[%c0_4, %c0_5] : memref<8x1xf32, #tpu.memory_space<vmem>>, vector<8x1xf32>
    tpu.vector_store %arg3[%c0_4, %c0_5], %7 {strides = array<i32>} : memref<8x1xf32, #tpu.memory_space<vmem>>, vector<8x1xf32>,
    %c0_i32_6 = arith.constant 0 : i32
    %9 = arith.cmpi eq, %arg1, %c0_i32_6 : i32
    %10 = arith.extui %9 : i1 to i32
    %c0_i32_7 = arith.constant 0 : i32
    %11 = arith.cmpi ne, %10, %c0_i32_7 : i32
    scf.if %11 {
      %c0_8 = arith.constant 0 : index
      %c0_9 = arith.constant 0 : index
      %12 = vector.load %arg3[%c0_8, %c0_9] : memref<8x1xf32, #tpu.memory_space<vmem>>, vector<8x1xf32>
      %cst_10 = arith.constant 3.906250e-03 : f32
      %13 = vector.broadcast %cst_10 : f32 to vector<8x1xf32>
      %14 = arith.mulf %12, %13 : vector<8x1xf32>
      %c0_11 = arith.constant 0 : index
      %c0_12 = arith.constant 0 : index
      %15 = vector.load %arg3[%c0_11, %c0_12] : memref<8x1xf32, #tpu.memory_space<vmem>>, vector<8x1xf32>
      tpu.vector_store %arg3[%c0_11, %c0_12], %14 {strides = array<i32>} : memref<8x1xf32, #tpu.memory_space<vmem>>, vector<8x1xf32>,
    } else {
    }
    return
  }
  func.func @transform_0(%arg0: i32, %arg1: i32) -> (i32, i32) {
    %c0_i32 = arith.constant 0 : i32
    return %arg0, %arg1 : i32, i32
  }
  func.func @transform_1(%arg0: i32, %arg1: i32) -> (i32, i32) {
    %c0_i32 = arith.constant 0 : i32
    %c0_i32_0 = arith.constant 0 : i32
    return %arg0, %c0_i32 : i32, i32
  }
}

</mosaic_0001>

<bundles_post_ra>
// kernel: tpu_custom_call.1
= control target key start
LH: loop header
LB: loop body
LE: loop exit
PB: predicated region body
PF: predicated region fallthrough
CT: control target
= control target key end

     0   :  { %6 = vsyncpa [#allocation3], 0  ;;  %s72_s6 = smov [#allocation2]   ;;  %s111_s0 = inlined_call_operand.hbm [shape: f32[8,256], index: 0, kind: input, shape index: {}]   ;;  %s112_s1 = inlined_call_operand.vmem [shape: f32[8,1], index: 1, kind: output, shape index: {}]  }
   0x1   :  { %s13_s7 = sshll.u32 %s72_s6, 4  ;;  %s48_s10 = scalar_lea.hbm %s111_s0, 256  ;;  %s14_s7 = int_to_ptr.vmem [resolvable:$true] %s13_s7 }
   0x2   :  { %p49_p0 = scmp.ne.s32.totalorder %s111_s0, %s48_s10  ;;  %p52_p1 = scmp.lt.u32.totalorder %s48_s10, %s111_s0 }
   0x4   :  { %p54_p2 = pnand %p52_p1, %p49_p0 }
   0x6   :  { %57 = shalt.err (!%p54_p2)
}
   0x7   :  { %s58_s15 = scalar_lea.vmem %s14_s7, 256  ;;  %p63_p4 = scmp.lt.s32.totalorder %s14_s7, %s14_s7 }
   0x8   :  { %p59_p3 = scmp.ne.s32.totalorder %s14_s7, %s58_s15  ;;  %p64_p5 = scmp.lt.s32.totalorder %s58_s15, %s58_s15 }
   0xa   :  { %p65_p6 = por %p64_p5, %p63_p4 }
   0xc   :  { %p66_p7 = pnand %p65_p6, %p59_p3 }
   0xe   :  { %69 = shalt.err (!%p66_p7)
}
   0xf   :  { %16 = dma.hbm_to_vmem [thread:$0]  %s111_s0, 256, %s14_s7, [#allocation3]  }
  0x10   :  { %70 = dma.done.wait [#allocation3], 256  }
  0x11   :  { %71 = vsyncadd [#allocation3], 4294967040  ;;  %vm24_vm0 = vcmask 7168   ;;  %v73_v0 = vmov 0.0   ;;  %v26_v1 = vld [vmem:[#allocation2] sm:$0xff]  ;;  %v27_v2 = vld [vmem:[#allocation2 + $0x8] sm:$0xff] }
  0x12   :  { %25 = vst.msk [vmem:[%s112_s1] sm:$0xff] %vm24_vm0, %v73_v0  ;;  %v29_v3 = vadd.f32 %v27_v2, %v26_v1 }
  0x14   :  { %30 = vadd.xlane.f32.xlu0 %v29_v3 }
  0x19   :  { %v28_v4 = vld [vmem:[%s112_s1] sm:$0xff] }
  0xa1   :  { %v31_v5 = vpop.xlane.xlu0 %30 }
  0xa2   :  { %v32_v6 = vadd.f32 %v31_v5, %v28_v4 }
  0xa4   :  { %34 = vst.msk [vmem:[%s112_s1] sm:$0xff] %vm24_vm0, %v32_v6 }
  0xab   :  { %v38_v7 = vld [vmem:[%s112_s1] sm:$0xff] }
  0xac   :  { %v39_v8 = vmul.f32 0.00390625, %v38_v7 }
  0xae   :  { %40 = vst.msk [vmem:[%s112_s1] sm:$0xff] %vm24_vm0, %v39_v8 }
  0xaf   :  { %45 = vsyncpa [#allocation3], 1 }

</bundles_post_ra>
